<compile_context>
chip_gen: v7x
topology: tpu7x:2x2x1
jax: 0.10.0
libtpu: 0.0.40
codegen_flags: <defaults>
</compile_context>

<pallas_src>
import functools

import jax
import jax.numpy as jnp
from jax import lax
from jax.experimental import pallas as pl
from jax.experimental.pallas import tpu as pltpu


MAX_ROW_BLOCK = 256    # batch rows per MXU tile (fills a 256-wide MXU; fine on v5e too)
MAX_NODE_TILE = 2048   # node (lane) tile; keeps basis/output blocks a few MiB each


def _round_up(x, m):
    return ((x + m - 1) // m) * m


def _split_hi_lo(x):
    """Split f32 into bf16 hi + bf16 lo so hi + lo ~= x to ~2^-17 relative error."""
    hi = x.astype(jnp.bfloat16)
    lo = (x - hi.astype(jnp.float32)).astype(jnp.bfloat16)
    return hi, lo


def _poly_matmul_kernel(w_hi_ref, w_lo_ref, b_hi_ref, b_lo_ref,
                        raw_ref, pmax_ref, *, tile_n, num_valid_nodes, mask_tail):
    """raw = W @ Basis for one (node_tile, batch_tile) block, plus fused per-tile row max.

    bf16x3 (hi*hi + hi*lo + lo*hi), f32 accumulation  ~=  lax.Precision.HIGH (3 MXU passes).
    """
    w_hi = w_hi_ref[...]
    b_hi = b_hi_ref[...]
    acc = jnp.dot(w_hi, b_hi, preferred_element_type=jnp.float32)
    acc = acc + jnp.dot(w_hi, b_lo_ref[...], preferred_element_type=jnp.float32)
    acc = acc + jnp.dot(w_lo_ref[...], b_hi, preferred_element_type=jnp.float32)
    raw_ref[...] = acc

    if mask_tail:
        # Only the last node tile has lane padding; padded basis columns give 0, which must not
        # leak into the row max (the true max can be negative). Statically skipped when the
        # node count is an exact multiple of the tile.
        lane = lax.broadcasted_iota(jnp.int32, acc.shape, 1)
        node_idx = pl.program_id(0) * tile_n + lane
        acc = jnp.where(node_idx < num_valid_nodes, acc, -jnp.inf)
    row_max = jnp.max(acc, axis=1, keepdims=True)                 # (row_block, 1)
    pmax_ref[...] = jnp.broadcast_to(row_max, pmax_ref.shape)     # lane-broadcast, unmasked store


def _scale_kernel(raw_ref, inv_ref, out_ref):
    # out = raw * (1 / (row_max + 1e-6)); inv block is (row_block, 1) -> lane broadcast.
    out_ref[...] = raw_ref[...] * inv_ref[...]


def make_nodal_grid(num_nodes, domain=(-1.0, 1.0)):
    grid_size = int(round(num_nodes ** 0.5))
    if grid_size * grid_size != num_nodes:
        raise ValueError("num_nodes must be a perfect square (e.g., 4, 9, 16, ...)")
    xs = jnp.linspace(domain[0], domain[1], grid_size, dtype=jnp.float32)
    ys = jnp.linspace(domain[0], domain[1], grid_size, dtype=jnp.float32)
    Xg, Yg = jnp.meshgrid(xs, ys, indexing="ij")
    return Xg.reshape(-1), Yg.reshape(-1)


def make_nodal_preprocessor(num_nodes=1225, domain=(-1.0, 1.0), max_degree=8):
    """Returns forward(exp_x, exp_y, coeff) mirroring NodalPreprocessor.forward.

    The monomial basis (analogue of the module's registered X/Y buffers) is built once here and
    cached in the closure, so the O(K*N) construction + padding never runs in the per-call path.
    """
    X, Y = make_nodal_grid(num_nodes, domain)
    N = num_nodes
    deg = max_degree + 1
    K = deg * deg

    tile_n = min(MAX_NODE_TILE, _round_up(N, 128))
    n_pad = _round_up(N, tile_n)
    k_pad = _round_up(K, 128)
    num_node_tiles = n_pad // tile_n
    mask_tail = (N % tile_n) != 0

    # Basis[i*deg + j, n] = X[n]^i * Y[n]^j — exact integer powers (correct for negative
    # coordinates, no transcendental work), padded once, split once into bf16 hi/lo.
    x_pows = jnp.stack([X ** i for i in range(deg)])              # (deg, N)
    y_pows = jnp.stack([Y ** j for j in range(deg)])              # (deg, N)
    basis = (x_pows[:, None, :] * y_pows[None, :, :]).reshape(K, N).astype(jnp.float32)
    basis_p = jnp.zeros((k_pad, n_pad), jnp.float32).at[:K, :N].set(basis)
    basis_hi, basis_lo = _split_hi_lo(basis_p)

    matmul_kernel = functools.partial(
        _poly_matmul_kernel, tile_n=tile_n, num_valid_nodes=N, mask_tail=mask_tail)

    @jax.jit
    def _forward(exp_x, exp_y, coeff, basis_hi, basis_lo):
        if exp_x.ndim == 1:
            exp_x, exp_y, coeff = exp_x[None], exp_y[None], coeff[None]
        B = exp_x.shape[0]

        # ---- wrapper-side layout plumbing (cheap XLA) ----------------------------------------
        # TODO(synk): non-integer exponents or exponents > max_degree have no exact monomial
        # basis representation; they are rounded / clipped here (silent change vs. jnp.power).
        ex = jnp.clip(jnp.round(exp_x).astype(jnp.int32), 0, max_degree)
        ey = jnp.clip(jnp.round(exp_y).astype(jnp.int32), 0, max_degree)
        k_idx = ex * deg + ey                                           # (B, T)
        w = jnp.zeros((B, K), jnp.float32)
        w = w.at[jnp.arange(B)[:, None], k_idx].add(coeff.astype(jnp.float32))  # scatter-add

        # Batch tile: as large as possible up to MAX_ROW_BLOCK (fills the MXU for big B) but no
        # larger than needed (avoids multiplying padded zero rows when B is tiny).
        row_block = min(MAX_ROW_BLOCK, _round_up(B, 8))
        b_pad = _round_up(B, row_block)
        num_batch_tiles = b_pad // row_block

        w_p = jnp.zeros((b_pad, k_pad), jnp.float32).at[:B, :K].set(w)
        w_hi, w_lo = _split_hi_lo(w_p)

        # ---- pass 1: tiled MXU matmul + fused per-tile row max -------------------------------
        raw, pmax = pl.pallas_call(
            matmul_kernel,
            out_shape=(
                jax.ShapeDtypeStruct((b_pad, n_pad), jnp.float32),
                jax.ShapeDtypeStruct((b_pad, num_node_tiles * 128), jnp.float32),
            ),
            grid_spec=pltpu.PrefetchScalarGridSpec(
                num_scalar_prefetch=0,
                # node tiles OUTER, batch tiles INNER: basis tile index depends only on the
                # outer axis -> DMA'd once per node tile, resident across the inner batch loop.
                grid=(num_node_tiles, num_batch_tiles),
                in_specs=[
                    pl.BlockSpec((row_block, k_pad), lambda n, b: (b, 0)),   # W hi
                    pl.BlockSpec((row_block, k_pad), lambda n, b: (b, 0)),   # W lo
                    pl.BlockSpec((k_pad, tile_n), lambda n, b: (0, n)),      # Basis hi
                    pl.BlockSpec((k_pad, tile_n), lambda n, b: (0, n)),      # Basis lo
                ],
                out_specs=[
                    pl.BlockSpec((row_block, tile_n), lambda n, b: (b, n)),  # raw nodal values
                    pl.BlockSpec((row_block, 128), lambda n, b: (b, n)),     # per-tile row max
                ],
            ),
            compiler_params=pltpu.CompilerParams(
                dimension_semantics=("parallel", "parallel")),
        )(w_hi, w_lo, basis_hi, basis_lo)

        # ---- tiny XLA glue: combine per-tile maxes, reference's +1e-6 guard, reciprocal ------
        max_val = jnp.max(pmax, axis=1, keepdims=True) + 1e-6            # (b_pad, 1)
        inv = (1.0 / max_val).astype(jnp.float32)

        # ---- pass 2: per-row scale (lane-dense blocks, unmasked stores) -----------------------
        out = pl.pallas_call(
            _scale_kernel,
            out_shape=jax.ShapeDtypeStruct((b_pad, n_pad), jnp.float32),
            grid_spec=pltpu.PrefetchScalarGridSpec(
                num_scalar_prefetch=0,
                grid=(num_batch_tiles, num_node_tiles),
                in_specs=[
                    pl.BlockSpec((row_block, tile_n), lambda b, n: (b, n)),
                    pl.BlockSpec((row_block, 1), lambda b, n: (b, 0)),
                ],
                out_specs=pl.BlockSpec((row_block, tile_n), lambda b, n: (b, n)),
            ),
            compiler_params=pltpu.CompilerParams(
                dimension_semantics=("parallel", "parallel")),
        )(raw, inv)

        return out[:B, :N]

    def forward(exp_x, exp_y, coeff):
        return _forward(exp_x, exp_y, coeff, basis_hi, basis_lo)

    return forward


def nodal_preprocessor_ref(exp_x, exp_y, coeff, X, Y):
    """Pure-JAX mirror of the torch forward (jnp.power path)."""
    if exp_x.ndim == 1:
        exp_x, exp_y, coeff = exp_x[None], exp_y[None], coeff[None]
    Xb = X[None, :, None]                                     # (1, N, 1)
    Yb = Y[None, :, None]
    nodal = jnp.sum(coeff[:, None, :] * (Xb ** exp_x[:, None, :]) * (Yb ** exp_y[:, None, :]),
                    axis=2)                                   # (B, N)
    max_val = jnp.max(nodal, axis=1, keepdims=True) + 1e-6
    return nodal / max_val


if __name__ == "__main__":
    key = jax.random.PRNGKey(0)
    B, T = 2, 8
    num_nodes = 256                       # grid_size = 16 (small, perfect square)

    forward = make_nodal_preprocessor(num_nodes=num_nodes, domain=(-1.0, 1.0), max_degree=8)

    k1, k2, k3 = jax.random.split(key, 3)
    # Integer-valued exponents (stored as float32) so (-x)**e is well defined.
    exp_x = jax.random.randint(k1, (B, T), 0, 4).astype(jnp.float32)
    exp_y = jax.random.randint(k2, (B, T), 0, 4).astype(jnp.float32)
    coeff = jax.random.normal(k3, (B, T), dtype=jnp.float32)

    out = jax.block_until_ready(forward(exp_x, exp_y, coeff))
    assert out.shape == (B, num_nodes), out.shape

    X, Y = make_nodal_grid(num_nodes, domain=(-1.0, 1.0))
    ref = nodal_preprocessor_ref(exp_x, exp_y, coeff, X, Y)
    # bf16x3 (~Precision.HIGH) matmul: validate error relative to the output scale.
    err = float(jnp.max(jnp.abs(out - ref)))
    scale = float(jnp.max(jnp.abs(ref))) + 1e-12
    assert err <= 1e-3 * scale, (err, scale)

    print("KERNEL_OK")
</pallas_src>

<mosaic_0001>
module attributes {stable_mosaic.version = 11 : i64} {
  func.func private @main(%arg0: i32) attributes {dimension_semantics = [#tpu.dimension_semantics<core_parallel>], iteration_bounds = array<i64: 2>, tpu.core_type = #tpu.core_type<sc_scalar_subcore>, window_params = []} {
    return
  }
}

module attributes {stable_mosaic.version = 11 : i64} {
  func.func private @main(%arg0: i32) attributes {dimension_semantics = [#tpu.dimension_semantics<core_parallel>], iteration_bounds = array<i64: 2>, tpu.core_type = #tpu.core_type<sc_scalar_subcore>, window_params = []} {
    return
  }
}

module attributes {stable_mosaic.version = 11 : i64} {
  func.func @_poly_matmul_kernel(%arg0: i32, %arg1: i32, %arg2: memref<8x128xbf16, #tpu.memory_space<vmem>>, %arg3: memref<8x128xbf16, #tpu.memory_space<vmem>>, %arg4: memref<128x256xbf16, #tpu.memory_space<vmem>>, %arg5: memref<128x256xbf16, #tpu.memory_space<vmem>>, %arg6: memref<8x256xf32, #tpu.memory_space<vmem>>, %arg7: memref<8x128xf32, #tpu.memory_space<vmem>>) attributes {dimension_semantics = [#tpu.dimension_semantics<parallel>, #tpu.dimension_semantics<parallel>], iteration_bounds = array<i64: 1, 1>, scalar_prefetch = 0 : i64, scratch_operands = 0 : i64, tpu.core_type = #tpu.core_type<tc>, window_params = [{transform_indices = @transform_0, window_bounds = array<i64: 8, 128>}, {transform_indices = @transform_1, window_bounds = array<i64: 8, 128>}, {transform_indices = @transform_2, window_bounds = array<i64: 128, 256>}, {transform_indices = @transform_3, window_bounds = array<i64: 128, 256>}, {transform_indices = @transform_4, window_bounds = array<i64: 8, 256>}, {transform_indices = @transform_5, window_bounds = array<i64: 8, 128>}]} {
    %c0 = arith.constant 0 : index
    %c0_0 = arith.constant 0 : index
    %0 = vector.load %arg2[%c0, %c0_0] : memref<8x128xbf16, #tpu.memory_space<vmem>>, vector<8x128xbf16>
    %c0_1 = arith.constant 0 : index
    %c0_2 = arith.constant 0 : index
    %1 = vector.load %arg4[%c0_1, %c0_2] : memref<128x256xbf16, #tpu.memory_space<vmem>>, vector<128x256xbf16>
    %cst = arith.constant dense<0.000000e+00> : vector<8x256xf32>
    %2 = tpu.matmul %0, %1, %cst {dimension_numbers = #tpu.dot_dimension_numbers<[1], [0], [0], [1], [0, 0, 1, 1], [], []>} : vector<8x128xbf16>, vector<128x256xbf16>, vector<8x256xf32> -> vector<8x256xf32>
    %c0_3 = arith.constant 0 : index
    %c0_4 = arith.constant 0 : index
    %3 = vector.load %arg5[%c0_3, %c0_4] : memref<128x256xbf16, #tpu.memory_space<vmem>>, vector<128x256xbf16>
    %cst_5 = arith.constant dense<0.000000e+00> : vector<8x256xf32>
    %4 = tpu.matmul %0, %3, %cst_5 {dimension_numbers = #tpu.dot_dimension_numbers<[1], [0], [0], [1], [0, 0, 1, 1], [], []>} : vector<8x128xbf16>, vector<128x256xbf16>, vector<8x256xf32> -> vector<8x256xf32>
    %5 = arith.addf %2, %4 : vector<8x256xf32>
    %c0_6 = arith.constant 0 : index
    %c0_7 = arith.constant 0 : index
    %6 = vector.load %arg3[%c0_6, %c0_7] : memref<8x128xbf16, #tpu.memory_space<vmem>>, vector<8x128xbf16>
    %cst_8 = arith.constant dense<0.000000e+00> : vector<8x256xf32>
    %7 = tpu.matmul %6, %1, %cst_8 {dimension_numbers = #tpu.dot_dimension_numbers<[1], [0], [0], [1], [0, 0, 1, 1], [], []>} : vector<8x128xbf16>, vector<128x256xbf16>, vector<8x256xf32> -> vector<8x256xf32>
    %8 = arith.addf %5, %7 : vector<8x256xf32>
    %c0_9 = arith.constant 0 : index
    %c0_10 = arith.constant 0 : index
    %9 = vector.load %arg6[%c0_9, %c0_10] : memref<8x256xf32, #tpu.memory_space<vmem>>, vector<8x256xf32>
    tpu.vector_store %arg6[%c0_9, %c0_10], %8 {strides = array<i32>} : memref<8x256xf32, #tpu.memory_space<vmem>>, vector<8x256xf32>,
    %cst_11 = arith.constant dense<0xFF800000> : vector<8xf32>
    %10 = vector.multi_reduction <maximumf>, %8, %cst_11 [1] : vector<8x256xf32> to vector<8xf32>
    %11 = vector.shape_cast %10 : vector<8xf32> to vector<8x1xf32>
    %12 = vector.shape_cast %11 : vector<8x1xf32> to vector<8x1xf32>
    %13 = vector.broadcast %12 : vector<8x1xf32> to vector<8x128xf32>
    %c0_12 = arith.constant 0 : index
    %c0_13 = arith.constant 0 : index
    %14 = vector.load %arg7[%c0_12, %c0_13] : memref<8x128xf32, #tpu.memory_space<vmem>>, vector<8x128xf32>
    tpu.vector_store %arg7[%c0_12, %c0_13], %13 {strides = array<i32>} : memref<8x128xf32, #tpu.memory_space<vmem>>, vector<8x128xf32>,
    return
  }
  func.func @transform_0(%arg0: i32, %arg1: i32) -> (i32, i32) {
    %c0_i32 = arith.constant 0 : i32
    %c0_i32_0 = arith.constant 0 : i32
    return %arg1, %c0_i32 : i32, i32
  }
  func.func @transform_1(%arg0: i32, %arg1: i32) -> (i32, i32) {
    %c0_i32 = arith.constant 0 : i32
    %c0_i32_0 = arith.constant 0 : i32
    return %arg1, %c0_i32 : i32, i32
  }
  func.func @transform_2(%arg0: i32, %arg1: i32) -> (i32, i32) {
    %c0_i32 = arith.constant 0 : i32
    %c0_i32_0 = arith.constant 0 : i32
    return %c0_i32, %arg0 : i32, i32
  }
  func.func @transform_3(%arg0: i32, %arg1: i32) -> (i32, i32) {
    %c0_i32 = arith.constant 0 : i32
    %c0_i32_0 = arith.constant 0 : i32
    return %c0_i32, %arg0 : i32, i32
  }
  func.func @transform_4(%arg0: i32, %arg1: i32) -> (i32, i32) {
    %c0_i32 = arith.constant 0 : i32
    return %arg1, %arg0 : i32, i32
  }
  func.func @transform_5(%arg0: i32, %arg1: i32) -> (i32, i32) {
    %c0_i32 = arith.constant 0 : i32
    return %arg1, %arg0 : i32, i32
  }
}

module attributes {stable_mosaic.version = 11 : i64} {
  func.func @_scale_kernel(%arg0: i32, %arg1: i32, %arg2: memref<8x256xf32, #tpu.memory_space<vmem>>, %arg3: memref<8x1xf32, #tpu.memory_space<vmem>>, %arg4: memref<8x256xf32, #tpu.memory_space<vmem>>) attributes {dimension_semantics = [#tpu.dimension_semantics<parallel>, #tpu.dimension_semantics<parallel>], iteration_bounds = array<i64: 1, 1>, scalar_prefetch = 0 : i64, scratch_operands = 0 : i64, tpu.core_type = #tpu.core_type<tc>, window_params = [{transform_indices = @transform_0, window_bounds = array<i64: 8, 256>}, {transform_indices = @transform_1, window_bounds = array<i64: 8, 1>}, {transform_indices = @transform_2, window_bounds = array<i64: 8, 256>}]} {
    %c0 = arith.constant 0 : index
    %c0_0 = arith.constant 0 : index
    %0 = vector.load %arg2[%c0, %c0_0] : memref<8x256xf32, #tpu.memory_space<vmem>>, vector<8x256xf32>
    %c0_1 = arith.constant 0 : index
    %c0_2 = arith.constant 0 : index
    %1 = vector.load %arg3[%c0_1, %c0_2] : memref<8x1xf32, #tpu.memory_space<vmem>>, vector<8x1xf32>
    %2 = vector.broadcast %1 : vector<8x1xf32> to vector<8x256xf32>
    %3 = arith.mulf %0, %2 : vector<8x256xf32>
    %c0_3 = arith.constant 0 : index
    %c0_4 = arith.constant 0 : index
    %4 = vector.load %arg4[%c0_3, %c0_4] : memref<8x256xf32, #tpu.memory_space<vmem>>, vector<8x256xf32>
    tpu.vector_store %arg4[%c0_3, %c0_4], %3 {strides = array<i32>} : memref<8x256xf32, #tpu.memory_space<vmem>>, vector<8x256xf32>,
    return
  }
  func.func @transform_0(%arg0: i32, %arg1: i32) -> (i32, i32) {
    %c0_i32 = arith.constant 0 : i32
    return %arg0, %arg1 : i32, i32
  }
  func.func @transform_1(%arg0: i32, %arg1: i32) -> (i32, i32) {
    %c0_i32 = arith.constant 0 : i32
    %c0_i32_0 = arith.constant 0 : i32
    return %arg0, %c0_i32 : i32, i32
  }
  func.func @transform_2(%arg0: i32, %arg1: i32) -> (i32, i32) {
    %c0_i32 = arith.constant 0 : i32
    return %arg0, %arg1 : i32, i32
  }
}

</mosaic_0001>

<bundles_post_ra>
// kernel: _forward.2
= control target key start
LH: loop header
LB: loop body
LE: loop exit
PB: predicated region body
PF: predicated region fallthrough
CT: control target
= control target key end

     0   :  { %v440_v1 = vmov 0   ;;  %s605_s2 = inlined_call_operand.vmem [shape: bf16[128,256], index: 2, kind: input, shape index: {}]   ;;  %s606_s3 = inlined_call_operand.vmem [shape: bf16[128,256], index: 3, kind: input, shape index: {}]   ;;  %s607_s0 = inlined_call_operand.vmem [shape: bf16[8,128], index: 0, kind: input, shape index: {}]   ;;  %s608_s1 = inlined_call_operand.vmem [shape: bf16[8,128], index: 1, kind: input, shape index: {}]   ;;  %s609_s4 = inlined_call_operand.vmem [shape: f32[8,256], index: 4, kind: output, shape index: {0}]   ;;  %s610_s5 = inlined_call_operand.vmem [shape: f32[8,128], index: 5, kind: output, shape index: {1}]  }
   0x1   :  { %v392_v0 = vld [vmem:[%s605_s2 + $0x4] ss:$8 sps:$4 sm:$0xff]   ;;  %286 = vmatprep.mubr.bf16.mxu0 %v440_v1  ;;  %165 = vmatprep.mubr.bf16.mxu1 %v440_v1  ;;  %v394_v2 = vld [vmem:[%s605_s2] ss:$8 sps:$4 sm:$0xff]   ;;  %v395_v3 = vld [vmem:[%s605_s2 + $0x14] ss:$8 sps:$4 sm:$0xff]  }
   0x2   :  { %254 = vmatprep.subr.bf16.mxu0 %v392_v0  ;;  %v485_v4 = vld [vmem:[%s605_s2 + $0x10] ss:$8 sps:$4 sm:$0xff]   ;;  %v490_v5 = vld [vmem:[%s605_s2 + $0x24] ss:$8 sps:$4 sm:$0xff]   ;;  %v496_v6 = vld [vmem:[%s605_s2 + $0x20] ss:$8 sps:$4 sm:$0xff]  }
   0x3   :  { %255 = vmatpush1.bf16.msra.mxu0 %v394_v2  ;;  %v502_v7 = vld [vmem:[%s605_s2 + $0x34] ss:$8 sps:$4 sm:$0xff]   ;;  %v507_v8 = vld [vmem:[%s605_s2 + $0x30] ss:$8 sps:$4 sm:$0xff]   ;;  %v404_v9 = vld [vmem:[%s605_s2 + $0x44] ss:$8 sps:$4 sm:$0xff]  }
   0x4   :  { %256 = vmatprep.subr.bf16.mxu0 %v395_v3  ;;  %v415_v10 = vld [vmem:[%s606_s3 + $0x4] ss:$8 sps:$4 sm:$0xff]   ;;  %v418_v11 = vld [vmem:[%s606_s3] ss:$8 sps:$4 sm:$0xff]   ;;  %v419_v12 = vld [vmem:[%s606_s3 + $0x14] ss:$8 sps:$4 sm:$0xff]  }
   0x5   :  { %133 = vmatprep.subr.bf16.mxu1 %v415_v10  ;;  %v406_v13 = vld [vmem:[%s605_s2 + $0x40] ss:$8 sps:$4 sm:$0xff]   ;;  %v421_v14 = vld [vmem:[%s606_s3 + $0x10] ss:$8 sps:$4 sm:$0xff]   ;;  %v422_v15 = vld [vmem:[%s606_s3 + $0x24] ss:$8 sps:$4 sm:$0xff]  }
   0x6   :  { %134 = vmatpush1.bf16.msra.mxu1 %v418_v11  ;;  %v407_v16 = vld [vmem:[%s605_s2 + $0x54] ss:$8 sps:$4 sm:$0xff]   ;;  %v409_v17 = vld [vmem:[%s605_s2 + $0x50] ss:$8 sps:$4 sm:$0xff]   ;;  %v424_v18 = vld [vmem:[%s606_s3 + $0x20] ss:$8 sps:$4 sm:$0xff]  }
   0x7   :  { %257 = vmatpush1.bf16.msra.mxu0 %v485_v4  ;;  %135 = vmatprep.subr.bf16.mxu1 %v419_v12  ;;  %v425_v19 = vld [vmem:[%s606_s3 + $0x34] ss:$8 sps:$4 sm:$0xff]   ;;  %v410_v20 = vld [vmem:[%s605_s2 + $0x64] ss:$8 sps:$4 sm:$0xff]   ;;  %v427_v21 = vld [vmem:[%s606_s3 + $0x30] ss:$8 sps:$4 sm:$0xff]  }
   0x8   :  { %258 = vmatprep.subr.bf16.mxu0 %v490_v5  ;;  %v412_v22 = vld [vmem:[%s605_s2 + $0x60] ss:$8 sps:$4 sm:$0xff]   ;;  %v428_v23 = vld [vmem:[%s606_s3 + $0x44] ss:$8 sps:$4 sm:$0xff]   ;;  %v413_v24 = vld [vmem:[%s605_s2 + $0x74] ss:$8 sps:$4 sm:$0xff]  }
   0x9   :  { %v430_v25 = vld [vmem:[%s606_s3 + $0x40] ss:$8 sps:$4 sm:$0xff]   ;;  %v417_v26 = vld [vmem:[%s605_s2 + $0x70] ss:$8 sps:$4 sm:$0xff]   ;;  %v431_v27 = vld [vmem:[%s606_s3 + $0x54] ss:$8 sps:$4 sm:$0xff]  }
   0xa   :  { %136 = vmatpush1.bf16.msra.mxu1 %v421_v14  ;;  %v433_v28 = vld [vmem:[%s606_s3 + $0x50] ss:$8 sps:$4 sm:$0xff]   ;;  %v20_v29 = vld [vmem:[%s607_s0] sm:$0xf]  ;;  %v434_v30 = vld [vmem:[%s606_s3 + $0x64] ss:$8 sps:$4 sm:$0xff]  }
   0xb   :  { %259 = vmatpush1.bf16.msra.mxu0 %v496_v6  ;;  %137 = vmatprep.subr.bf16.mxu1 %v422_v15  ;;  %v436_v31 = vld [vmem:[%s606_s3 + $0x60] ss:$8 sps:$4 sm:$0xff]   ;;  %v437_v32 = vld [vmem:[%s606_s3 + $0x74] ss:$8 sps:$4 sm:$0xff]   ;;  %v439_v33 = vld [vmem:[%s606_s3 + $0x70] ss:$8 sps:$4 sm:$0xff]  }
   0xc   :  { %260 = vmatprep.subr.bf16.mxu0 %v502_v7  ;;  %v295_v34 = vld [vmem:[%s608_s1] sm:$0xf] }
   0xe   :  { %138 = vmatpush1.bf16.msra.mxu1 %v424_v18 }
   0xf   :  { %261 = vmatpush1.bf16.msra.mxu0 %v507_v8  ;;  %139 = vmatprep.subr.bf16.mxu1 %v425_v19 }
  0x10   :  { %262 = vmatprep.subr.bf16.mxu0 %v404_v9 }
  0x12   :  { %140 = vmatpush1.bf16.msra.mxu1 %v427_v21 }
  0x13   :  { %263 = vmatpush1.bf16.msra.mxu0 %v406_v13  ;;  %141 = vmatprep.subr.bf16.mxu1 %v428_v23 }
  0x14   :  { %264 = vmatprep.subr.bf16.mxu0 %v407_v16 }
  0x16   :  { %142 = vmatpush1.bf16.msra.mxu1 %v430_v25 }
  0x17   :  { %265 = vmatpush1.bf16.msra.mxu0 %v409_v17  ;;  %143 = vmatprep.subr.bf16.mxu1 %v431_v27 }
  0x18   :  { %266 = vmatprep.subr.bf16.mxu0 %v410_v20 }
  0x1a   :  { %144 = vmatpush1.bf16.msra.mxu1 %v433_v28 }
  0x1b   :  { %267 = vmatpush1.bf16.msra.mxu0 %v412_v22  ;;  %145 = vmatprep.subr.bf16.mxu1 %v434_v30 }
  0x1c   :  { %268 = vmatprep.subr.bf16.mxu0 %v413_v24 }
  0x1e   :  { %146 = vmatpush1.bf16.msra.mxu1 %v436_v31 }
  0x1f   :  { %269 = vmatpush1.bf16.msra.mxu0 %v417_v26  ;;  %147 = vmatprep.subr.bf16.mxu1 %v437_v32 }
  0x20   :  { %296 = vmatprep.subr.bf16.mxu0 %v392_v0 }
  0x22   :  { %287 = vmatmul.mubr.bf16.vlgmr.msra.gmra.mrb[0].mxu0 %v20_v29  ;;  %148 = vmatpush1.bf16.msra.mxu1 %v439_v33 }
  0x23   :  { %297 = vmatpush1.bf16.msra.mxu0 %v394_v2  ;;  %328 = vmatprep.mubr.bf16.mxu0 %v440_v1 }
  0x24   :  { %298 = vmatprep.subr.bf16.mxu0 %v395_v3 }
  0x25   :  { %166 = vmatmul.mubr.bf16.vlgmr.msra.gmra.mrb[0].mxu1 %v20_v29 }
  0x27   :  { %299 = vmatpush1.bf16.msra.mxu0 %v485_v4 }
  0x28   :  { %300 = vmatprep.subr.bf16.mxu0 %v490_v5 }
  0x2b   :  { %301 = vmatpush1.bf16.msra.mxu0 %v496_v6 }
  0x2c   :  { %302 = vmatprep.subr.bf16.mxu0 %v502_v7 }
  0x2f   :  { %303 = vmatpush1.bf16.msra.mxu0 %v507_v8 }
  0x30   :  { %304 = vmatprep.subr.bf16.mxu0 %v404_v9 }
  0x33   :  { %305 = vmatpush1.bf16.msra.mxu0 %v406_v13 }
  0x34   :  { %306 = vmatprep.subr.bf16.mxu0 %v407_v16 }
  0x37   :  { %307 = vmatpush1.bf16.msra.mxu0 %v409_v17 }
  0x38   :  { %308 = vmatprep.subr.bf16.mxu0 %v410_v20 }
  0x3b   :  { %309 = vmatpush1.bf16.msra.mxu0 %v412_v22 }
  0x3c   :  { %310 = vmatprep.subr.bf16.mxu0 %v413_v24 }
  0x3f   :  { %311 = vmatpush1.bf16.msra.mxu0 %v417_v26 }
  0x42   :  { %329 = vmatmul.mubr.bf16.vlgmr.msra.gmra.mrb[0].mxu0 %v295_v34 }
  0xf8   :  { %v167_v35 = vpop.f32.mrb[0].mxu1 }
  0xf9   :  { %v169_v36 = vpop.f32.mrb[1].mxu1 }
  0xfa   :  { %v171_v37 = vpop.f32.mrb[2].mxu1 }
  0xfb   :  { %v172_v38 = vpop.f32.mrb[3].mxu1 }
 0x115   :  { %v330_v39 = vpop.f32.mrb[0].mxu0 }
 0x116   :  { %v385_v40 = vadd.f32 %v330_v39, %v167_v35  ;;  %v332_v41 = vpop.f32.mrb[1].mxu0 }
 0x117   :  { %v386_v42 = vadd.f32 %v332_v41, %v169_v36  ;;  %v334_v43 = vpop.f32.mrb[2].mxu0 }
 0x118   :  { %339 = vst [vmem:[%s609_s4] sm:$0xff] %v385_v40  ;;  %v335_v44 = vpop.f32.mrb[3].mxu0 }
 0x119   :  { %340 = vst [vmem:[%s609_s4 + $0x8] sm:$0xff] %v386_v42  ;;  %v341_v45 = vmax.f32 %v385_v40, %v386_v42 }
 0x11b   :  { %342 = vmax.xlane.f32.xlu0 %v341_v45 }
 0x1a8   :  { %v343_v46 = vpop.xlane.xlu0 %342 }
 0x1a9   :  { %344 = vst [vmem:[%s610_s5] sm:$0xff] %v343_v46 }

// kernel: _forward.3
= control target key start
LH: loop header
LB: loop body
LE: loop exit
PB: predicated region body
PF: predicated region fallthrough
CT: control target
= control target key end

     0   :  { %v29_v0 = vmov 0   ;;  %s60_s1 = inlined_call_operand.vmem [shape: f32[8,1], index: 1, kind: input, shape index: {}]   ;;  %s61_s0 = inlined_call_operand.vmem [shape: f32[8,256], index: 0, kind: input, shape index: {}]   ;;  %s62_s2 = inlined_call_operand.vmem [shape: f32[8,256], index: 2, kind: output, shape index: {}]  }
   0x1   :  { %28 = vset.pattern.permute.xlu0 %v29_v0  ;;  %v13_v1 = vld [vmem:[%s60_s1] sm:$0xff]  ;;  %v12_v3 = vld [vmem:[%s61_s0 + $0x8] sm:$0xff] }
   0x2   :  { %16 = vperm.xlu0 %28, %v13_v1   ;;  %v11_v2 = vld [vmem:[%s61_s0] sm:$0xff] }
  0x81   :  { %v17_v4 = vpop.permute.xlu0 %16 }
  0x82   :  { %v19_v5 = vmul.f32 %v17_v4, %v11_v2  ;;  %v20_v6 = vmul.f32 %v17_v4, %v12_v3 }
  0x84   :  { %21 = vst [vmem:[%s62_s2] sm:$0xff] %v19_v5  ;;  %22 = vst [vmem:[%s62_s2 + $0x8] sm:$0xff] %v20_v6 }

</bundles_post_ra>
